<compile_context>
chip_gen: v7x
topology: tpu7x:2x2x1
jax: 0.10.0
libtpu: 0.0.40
codegen_flags: <defaults>
</compile_context>

<pallas_src>
import functools

import jax
import jax.numpy as jnp
from jax.experimental import pallas as pl
from jax.experimental.pallas import tpu as pltpu

LEAKY_SLOPE = 0.2     # PyG GATConv default negative_slope
NEG_INF = -1e30
VMEM_LIMIT = 32 * 1024 * 1024   # explicit scoped-VMEM budget (safe on v5e/v6e/v7x)


# --------------------------------------------------------------------------
# Kernels
# --------------------------------------------------------------------------
def gat_layer_kernel(hin_full_ref, hin_rows_ref, adjb_ref, pk_ref, out_ref,
                     *, apply_elu):
    """One single-head GATConv layer for a tile of destination rows.

    hin_full_ref : [N, Din]      layer input for ALL (source) nodes, resident
    hin_rows_ref : [T, Din]      layer input for this tile's destination rows
    adjb_ref     : [T, N]        additive adjacency bias (0 real edge, -1e30 none)
    pk_ref       : [Din+1, F+2]  packed [ w | w@[a_src|a_dst] ] over [ b | 0 ]
    out_ref      : [T, F]
    """
    din = hin_full_ref.shape[1]
    f = pk_ref.shape[1] - 2

    pk = pk_ref[...]
    w = pk[:din, :f]             # [Din, F]
    wa = pk[:din, f:]            # [Din, 2]  (fused attention projections)
    b = pk[din:din + 1, :f]      # [1, F]

    hin_full = hin_full_ref[...]                                       # [N, Din]
    hin_rows = hin_rows_ref[...]                                       # [T, Din]

    # TODO(synk): operands kept f32 (not bf16) to preserve the module's f32
    # forward semantics; f32 accumulation either way.
    h = jnp.dot(hin_full, w, preferred_element_type=jnp.float32)       # [N, F]
    s_src = jnp.dot(hin_full, wa[:, 0:1],
                    preferred_element_type=jnp.float32)                # [N, 1]
    s_dst = jnp.dot(hin_rows, wa[:, 1:2],
                    preferred_element_type=jnp.float32)                # [T, 1]

    # e[i, j] = LeakyReLU(s_dst[i] + s_src[j]) + adj_bias[i, j]  (edge j -> i)
    e = s_dst + s_src.T                                                # [T, N]
    e = jnp.where(e > 0, e, LEAKY_SLOPE * e)
    e = e + adjb_ref[...]
    e = e - jnp.max(e, axis=1, keepdims=True)
    p = jnp.exp(e)              # masked entries underflow to 0 (self-loops exist)
    inv = pl.reciprocal(jnp.sum(p, axis=1, keepdims=True), approx=True)
    alpha = p * inv                                                    # [T, N]

    out = jnp.dot(alpha, h, preferred_element_type=jnp.float32) + b    # [T, F]
    if apply_elu:
        out = jnp.where(out > 0, out, jnp.exp(out) - 1.0)   # ELU
    out_ref[...] = out


def pred_loss_kernel(h_ref, p1_ref, p2_ref, y_ref, m_ref,
                     logits_ref, loss_ref, num_ref, den_ref, *, out_dim):
    """Predictor (Linear->ReLU->Linear) + masked BCE-with-logits for one row tile.

    h_ref      : [T, F]
    p1_ref     : [F+1, H]       packed [wp1 ; bp1]
    p2_ref     : [H+1, Cpad]    packed [wp2 ; bp2], zero-padded to 128 lanes
    y_ref      : [T, Cpad]      labels, zero-padded
    m_ref      : [T, 1]         row train-mask (float 0/1)
    logits_ref : [T, Cpad]      lane-dense logits output (sliced in wrapper)
    loss_ref   : [1, 1]         final scalar loss (written on last tile)
    num_ref, den_ref : [1, 1]   persistent VMEM accumulators
    """
    i = pl.program_id(0)

    @pl.when(i == 0)
    def _():
        num_ref[...] = jnp.zeros_like(num_ref)
        den_ref[...] = jnp.zeros_like(den_ref)

    f = h_ref.shape[1]
    hdim = p1_ref.shape[1]
    p1pk = p1_ref[...]
    wp1 = p1pk[:f, :]
    bp1 = p1pk[f:f + 1, :]
    p2pk = p2_ref[...]
    wp2 = p2pk[:hdim, :]
    bp2 = p2pk[hdim:hdim + 1, :]

    z = jnp.dot(h_ref[...], wp1, preferred_element_type=jnp.float32) + bp1
    z = jnp.maximum(z, 0.0)
    # TODO(synk): predictor dropout omitted (eval-mode semantics).
    logits = jnp.dot(z, wp2, preferred_element_type=jnp.float32) + bp2  # [T, Cpad]
    logits_ref[...] = logits

    y = y_ref[...]
    m = m_ref[...]                                                      # [T, 1]
    col = jax.lax.broadcasted_iota(jnp.int32, logits.shape, 1)
    valid = jnp.where(col < out_dim, 1.0, 0.0) * m                      # [T, Cpad]
    bce = (jnp.maximum(logits, 0.0) - logits * y
           + jnp.log(1.0 + jnp.exp(-jnp.abs(logits))))
    num_ref[...] += jnp.sum(bce * valid, keepdims=True)
    den_ref[...] += jnp.sum(m, keepdims=True)

    @pl.when(i == pl.num_programs(0) - 1)
    def _():
        # TODO(synk): (1,1) loss kept in VMEM (not SMEM) to avoid scalar-extract
        # lowering risk; accumulation already lives in persistent scratch.
        loss_ref[...] = num_ref[...] / (den_ref[...] * float(out_dim))


# --------------------------------------------------------------------------
# pallas_call wrappers
# --------------------------------------------------------------------------
def _row_tile(n, target):
    """Largest row tile <= target that divides n and is a multiple of 8."""
    if n % 8 != 0:
        return n                    # single full-extent block fallback
    t = max(8, min(target, n) - (min(target, n) % 8))
    while n % t != 0:
        t -= 8
    return t


def _pack_gat(w, a_src, a_dst, b):
    """Pack one GAT layer's params: [[w | w@[a_src|a_dst]], [b | 0]]."""
    aw = jnp.concatenate([a_src, a_dst], axis=1)                  # [F, 2]
    top = jnp.concatenate([w, w @ aw], axis=1)                    # [Din, F+2]
    bot = jnp.concatenate([b, jnp.zeros((1, 2), jnp.float32)], axis=1)
    return jnp.concatenate([top, bot], axis=0)                    # [Din+1, F+2]


def _gat_layer_call(h_in, adj_bias, pack, *, apply_elu, tile):
    n, din = h_in.shape
    f = pack.shape[1] - 2
    kern = functools.partial(gat_layer_kernel, apply_elu=apply_elu)
    return pl.pallas_call(
        kern,
        out_shape=jax.ShapeDtypeStruct((n, f), jnp.float32),
        grid=(n // tile,),
        in_specs=[
            pl.BlockSpec((n, din), lambda i: (0, 0)),        # full source features
            pl.BlockSpec((tile, din), lambda i: (i, 0)),     # destination rows
            pl.BlockSpec((tile, n), lambda i: (i, 0)),       # adjacency bias rows
            pl.BlockSpec(pack.shape, lambda i: (0, 0)),      # packed params
        ],
        out_specs=pl.BlockSpec((tile, f), lambda i: (i, 0)),
        compiler_params=pltpu.CompilerParams(
            dimension_semantics=("parallel",),               # v7x: 2 TCs split rows
            vmem_limit_bytes=VMEM_LIMIT,
        ),
    )(h_in, h_in, adj_bias, pack)


def _predictor_loss_call(h2, p1pk, p2pk, labels_pad, mask_f, *, out_dim, tile):
    n, f = h2.shape
    c_pad = p2pk.shape[1]
    kern = functools.partial(pred_loss_kernel, out_dim=out_dim)
    return pl.pallas_call(
        kern,
        out_shape=(jax.ShapeDtypeStruct((n, c_pad), jnp.float32),
                   jax.ShapeDtypeStruct((1, 1), jnp.float32)),
        grid=(n // tile,),
        in_specs=[
            pl.BlockSpec((tile, f), lambda i: (i, 0)),
            pl.BlockSpec(p1pk.shape, lambda i: (0, 0)),
            pl.BlockSpec(p2pk.shape, lambda i: (0, 0)),
            pl.BlockSpec((tile, c_pad), lambda i: (i, 0)),
            pl.BlockSpec((tile, 1), lambda i: (i, 0)),
        ],
        out_specs=(pl.BlockSpec((tile, c_pad), lambda i: (i, 0)),
                   pl.BlockSpec((1, 1), lambda i: (0, 0))),
        scratch_shapes=[pltpu.VMEM((1, 1), jnp.float32),     # loss numerator
                        pltpu.VMEM((1, 1), jnp.float32)],    # loss denominator
        compiler_params=pltpu.CompilerParams(
            dimension_semantics=("arbitrary",),              # cross-tile loss accum
            vmem_limit_bytes=VMEM_LIMIT,
        ),
    )(h2, p1pk, p2pk, labels_pad, mask_f)


def gat_client_forward(x, adj, params, labels, mask_f, *, row_tile_target=256):
    """Full GATClient forward: (logits [N, out_dim], scalar masked BCE loss)."""
    n = x.shape[0]
    out_dim = params["wp2"].shape[1]
    # NOTE: row_tile_target=256 keeps adj row tiles modest even on v7x (64 MiB VMEM).
    tile = _row_tile(n, row_tile_target)

    adj_bias = jnp.where(adj > 0, 0.0, NEG_INF).astype(jnp.float32)

    pk1 = _pack_gat(params["w1"], params["as1"], params["ad1"], params["b1"])
    pk2 = _pack_gat(params["w2"], params["as2"], params["ad2"], params["b2"])

    h1 = _gat_layer_call(x, adj_bias, pk1, apply_elu=True, tile=tile)
    # TODO(synk): dropout between GAT layers omitted (eval-mode semantics).
    h2 = _gat_layer_call(h1, adj_bias, pk2, apply_elu=False, tile=tile)

    # Lane-dense predictor output: pad final layer to 128 lanes, slice after.
    c_pad = ((out_dim + 127) // 128) * 128
    p1pk = jnp.concatenate([params["wp1"], params["bp1"]], axis=0)
    wp2_pad = jnp.zeros((params["wp2"].shape[0], c_pad), jnp.float32)
    wp2_pad = wp2_pad.at[:, :out_dim].set(params["wp2"])
    bp2_pad = jnp.zeros((1, c_pad), jnp.float32).at[:, :out_dim].set(params["bp2"])
    p2pk = jnp.concatenate([wp2_pad, bp2_pad], axis=0)
    labels_pad = jnp.zeros((n, c_pad), jnp.float32).at[:, :out_dim].set(labels)

    logits_pad, loss = _predictor_loss_call(
        h2, p1pk, p2pk, labels_pad, mask_f, out_dim=out_dim, tile=tile)
    return logits_pad[:, :out_dim], loss[0, 0]


# --------------------------------------------------------------------------
# pure-JAX reference (same math) for correctness check
# --------------------------------------------------------------------------
def _ref_gat_layer(h_in, adj, w, a_src, a_dst, b):
    h = h_in @ w
    s_src = h @ a_src
    s_dst = h @ a_dst
    e = s_dst + s_src.T
    e = jnp.where(e > 0, e, LEAKY_SLOPE * e)
    e = jnp.where(adj > 0, e, NEG_INF)
    e = e - jnp.max(e, axis=1, keepdims=True)
    p = jnp.where(adj > 0, jnp.exp(e), 0.0)
    alpha = p / jnp.sum(p, axis=1, keepdims=True)
    return alpha @ h + b


def ref_forward(x, adj, params, labels, mask_f):
    h1 = _ref_gat_layer(x, adj, params["w1"], params["as1"], params["ad1"], params["b1"])
    h1 = jnp.where(h1 > 0, h1, jnp.exp(h1) - 1.0)
    h2 = _ref_gat_layer(h1, adj, params["w2"], params["as2"], params["ad2"], params["b2"])
    p1 = jnp.maximum(h2 @ params["wp1"] + params["bp1"], 0.0)
    logits = p1 @ params["wp2"] + params["bp2"]
    bce = (jnp.maximum(logits, 0.0) - logits * labels
           + jnp.log(1.0 + jnp.exp(-jnp.abs(logits))))
    loss = jnp.sum(bce * mask_f) / (jnp.sum(mask_f) * logits.shape[1])
    return logits, loss


if __name__ == "__main__":
    # small, deterministic problem (multiple row tiles so the grid path is exercised)
    N = 32
    in_dim = 16
    gnn_hidden_dim = 32
    gnn_out_dim = 32
    pred_hidden_dim = 32
    out_dim = 4

    key = jax.random.PRNGKey(0)
    ks = jax.random.split(key, 16)

    def init(k, shape, scale=0.1):
        return (scale * jax.random.normal(k, shape)).astype(jnp.float32)

    params = {
        # GAT layer 1: in_dim -> gnn_hidden_dim
        "w1":  init(ks[0], (in_dim, gnn_hidden_dim)),
        "as1": init(ks[1], (gnn_hidden_dim, 1)),
        "ad1": init(ks[2], (gnn_hidden_dim, 1)),
        "b1":  init(ks[3], (1, gnn_hidden_dim)),
        # GAT layer 2: gnn_hidden_dim -> gnn_out_dim
        "w2":  init(ks[4], (gnn_hidden_dim, gnn_out_dim)),
        "as2": init(ks[5], (gnn_out_dim, 1)),
        "ad2": init(ks[6], (gnn_out_dim, 1)),
        "b2":  init(ks[7], (1, gnn_out_dim)),
        # Predictor: gnn_out_dim -> pred_hidden_dim -> out_dim
        "wp1": init(ks[8], (gnn_out_dim, pred_hidden_dim)),
        "bp1": init(ks[9], (1, pred_hidden_dim)),
        "wp2": init(ks[10], (pred_hidden_dim, out_dim)),
        "bp2": init(ks[11], (1, out_dim)),
    }

    # node features
    x = jax.random.normal(ks[12], (N, in_dim)).astype(jnp.float32)

    # bidirectional ring + chords; dense adj[i, j] = 1 iff edge j -> i
    src = jnp.concatenate([jnp.arange(N), (jnp.arange(N) + 1) % N,
                           jnp.array([0, 5, 3]), jnp.array([8, 12, 20])])
    dst = jnp.concatenate([(jnp.arange(N) + 1) % N, jnp.arange(N),
                           jnp.array([8, 12, 20]), jnp.array([0, 5, 3])])
    adj = jnp.zeros((N, N), jnp.float32).at[dst, src].set(1.0)
    adj = adj.at[jnp.arange(N), jnp.arange(N)].set(1.0)   # self-loops (GATConv default)

    # train_mask (first half of nodes) and multi-label targets
    train_mask = jnp.arange(N) < (N // 2)
    mask_f = train_mask.astype(jnp.float32).reshape(N, 1)
    target_labels = (jax.random.uniform(ks[13], (N, out_dim)) > 0.5).astype(jnp.float32)

    forward_fn = jax.jit(functools.partial(gat_client_forward, row_tile_target=8))
    logits, loss = forward_fn(x, adj, params, target_labels, mask_f)
    jax.block_until_ready((logits, loss))

    ref_logits, ref_loss = ref_forward(x, adj, params, target_labels, mask_f)
    assert logits.shape == (N, out_dim)
    assert jnp.allclose(logits, ref_logits, atol=2e-3, rtol=2e-3), "logits mismatch"
    assert jnp.allclose(loss, ref_loss, atol=2e-3, rtol=2e-3), "loss mismatch"

    print("KERNEL_OK")
</pallas_src>

<mosaic_0001>
module attributes {stable_mosaic.version = 11 : i64} {
  func.func @gat_layer_kernel(%arg0: i32, %arg1: memref<32x16xf32, #tpu.memory_space<vmem>>, %arg2: memref<8x16xf32, #tpu.memory_space<vmem>>, %arg3: memref<8x32xf32, #tpu.memory_space<vmem>>, %arg4: memref<17x34xf32, #tpu.memory_space<vmem>>, %arg5: memref<8x32xf32, #tpu.memory_space<vmem>>) attributes {dimension_semantics = [#tpu.dimension_semantics<parallel>], iteration_bounds = array<i64: 4>, scalar_prefetch = 0 : i64, scratch_operands = 0 : i64, tpu.core_type = #tpu.core_type<tc>, window_params = [{pipeline_mode = #tpu.pipeline_mode<synchronous>, transform_indices = @transform_0, window_bounds = array<i64: 32, 16>}, {transform_indices = @transform_1, window_bounds = array<i64: 8, 16>}, {transform_indices = @transform_2, window_bounds = array<i64: 8, 32>}, {pipeline_mode = #tpu.pipeline_mode<synchronous>, transform_indices = @transform_3, window_bounds = array<i64: 17, 34>}, {transform_indices = @transform_4, window_bounds = array<i64: 8, 32>}]} {
    %c0 = arith.constant 0 : index
    %c0_0 = arith.constant 0 : index
    %0 = vector.load %arg4[%c0, %c0_0] : memref<17x34xf32, #tpu.memory_space<vmem>>, vector<17x34xf32>
    %1 = vector.extract_strided_slice %0 {offsets = [0, 0], sizes = [16, 32], strides = [1, 1]} : vector<17x34xf32> to vector<16x32xf32>
    %2 = vector.extract_strided_slice %0 {offsets = [0, 32], sizes = [16, 2], strides = [1, 1]} : vector<17x34xf32> to vector<16x2xf32>
    %3 = vector.extract_strided_slice %0 {offsets = [16, 0], sizes = [1, 32], strides = [1, 1]} : vector<17x34xf32> to vector<1x32xf32>
    %c0_1 = arith.constant 0 : index
    %c0_2 = arith.constant 0 : index
    %4 = vector.load %arg1[%c0_1, %c0_2] : memref<32x16xf32, #tpu.memory_space<vmem>>, vector<32x16xf32>
    %c0_3 = arith.constant 0 : index
    %c0_4 = arith.constant 0 : index
    %5 = vector.load %arg2[%c0_3, %c0_4] : memref<8x16xf32, #tpu.memory_space<vmem>>, vector<8x16xf32>
    %cst = arith.constant dense<0.000000e+00> : vector<32x32xf32>
    %6 = tpu.matmul %4, %1, %cst {dimension_numbers = #tpu.dot_dimension_numbers<[1], [0], [0], [1], [0, 0, 1, 1], [], []>} : vector<32x16xf32>, vector<16x32xf32>, vector<32x32xf32> -> vector<32x32xf32>
    %7 = vector.extract_strided_slice %2 {offsets = [0, 0], sizes = [16, 1], strides = [1, 1]} : vector<16x2xf32> to vector<16x1xf32>
    %cst_5 = arith.constant dense<0.000000e+00> : vector<32x1xf32>
    %8 = tpu.matmul %4, %7, %cst_5 {dimension_numbers = #tpu.dot_dimension_numbers<[1], [0], [0], [1], [0, 0, 1, 1], [], []>} : vector<32x16xf32>, vector<16x1xf32>, vector<32x1xf32> -> vector<32x1xf32>
    %9 = vector.extract_strided_slice %2 {offsets = [0, 1], sizes = [16, 1], strides = [1, 1]} : vector<16x2xf32> to vector<16x1xf32>
    %cst_6 = arith.constant dense<0.000000e+00> : vector<8x1xf32>
    %10 = tpu.matmul %5, %9, %cst_6 {dimension_numbers = #tpu.dot_dimension_numbers<[1], [0], [0], [1], [0, 0, 1, 1], [], []>} : vector<8x16xf32>, vector<16x1xf32>, vector<8x1xf32> -> vector<8x1xf32>
    %11 = tpu.transpose %8, [1, 0] : vector<32x1xf32> -> vector<1x32xf32>
    %12 = vector.broadcast %10 : vector<8x1xf32> to vector<8x32xf32>
    %13 = vector.broadcast %11 : vector<1x32xf32> to vector<8x32xf32>
    %14 = arith.addf %12, %13 : vector<8x32xf32>
    %cst_7 = arith.constant 0.000000e+00 : f32
    %15 = vector.broadcast %cst_7 : f32 to vector<8x32xf32>
    %16 = arith.cmpf ogt, %14, %15 : vector<8x32xf32>
    %cst_8 = arith.constant 2.000000e-01 : f32
    %17 = vector.broadcast %cst_8 : f32 to vector<8x32xf32>
    %18 = arith.mulf %17, %14 : vector<8x32xf32>
    %19 = arith.select %16, %14, %18 : vector<8x32xi1>, vector<8x32xf32>
    %c0_9 = arith.constant 0 : index
    %c0_10 = arith.constant 0 : index
    %20 = vector.load %arg3[%c0_9, %c0_10] : memref<8x32xf32, #tpu.memory_space<vmem>>, vector<8x32xf32>
    %21 = arith.addf %19, %20 : vector<8x32xf32>
    %cst_11 = arith.constant dense<0xFF800000> : vector<8xf32>
    %22 = vector.multi_reduction <maximumf>, %21, %cst_11 [1] : vector<8x32xf32> to vector<8xf32>
    %23 = vector.shape_cast %22 : vector<8xf32> to vector<8x1xf32>
    %24 = vector.broadcast %23 : vector<8x1xf32> to vector<8x32xf32>
    %25 = arith.subf %21, %24 : vector<8x32xf32>
    %26 = math.exp %25 : vector<8x32xf32>
    %cst_12 = arith.constant dense<0.000000e+00> : vector<8xf32>
    %27 = vector.multi_reduction <add>, %26, %cst_12 [1] : vector<8x32xf32> to vector<8xf32>
    %28 = vector.shape_cast %27 : vector<8xf32> to vector<8x1xf32>
    %29 = tpu.reciprocal %28 {approx = true} : vector<8x1xf32> -> vector<8x1xf32>
    %30 = vector.broadcast %29 : vector<8x1xf32> to vector<8x32xf32>
    %31 = arith.mulf %26, %30 : vector<8x32xf32>
    %cst_13 = arith.constant dense<0.000000e+00> : vector<8x32xf32>
    %32 = tpu.matmul %31, %6, %cst_13 {dimension_numbers = #tpu.dot_dimension_numbers<[1], [0], [0], [1], [0, 0, 1, 1], [], []>} : vector<8x32xf32>, vector<32x32xf32>, vector<8x32xf32> -> vector<8x32xf32>
    %33 = vector.broadcast %3 : vector<1x32xf32> to vector<8x32xf32>
    %34 = arith.addf %32, %33 : vector<8x32xf32>
    %cst_14 = arith.constant 0.000000e+00 : f32
    %35 = vector.broadcast %cst_14 : f32 to vector<8x32xf32>
    %36 = arith.cmpf ogt, %34, %35 : vector<8x32xf32>
    %37 = math.exp %34 : vector<8x32xf32>
    %cst_15 = arith.constant 1.000000e+00 : f32
    %38 = vector.broadcast %cst_15 : f32 to vector<8x32xf32>
    %39 = arith.subf %37, %38 : vector<8x32xf32>
    %40 = arith.select %36, %34, %39 : vector<8x32xi1>, vector<8x32xf32>
    %c0_16 = arith.constant 0 : index
    %c0_17 = arith.constant 0 : index
    %41 = vector.load %arg5[%c0_16, %c0_17] : memref<8x32xf32, #tpu.memory_space<vmem>>, vector<8x32xf32>
    tpu.vector_store %arg5[%c0_16, %c0_17], %40 {strides = array<i32>} : memref<8x32xf32, #tpu.memory_space<vmem>>, vector<8x32xf32>,
    return
  }
  func.func @transform_0(%arg0: i32) -> (i32, i32) {
    %c0_i32 = arith.constant 0 : i32
    %c0_i32_0 = arith.constant 0 : i32
    %c0_i32_1 = arith.constant 0 : i32
    return %c0_i32, %c0_i32_0 : i32, i32
  }
  func.func @transform_1(%arg0: i32) -> (i32, i32) {
    %c0_i32 = arith.constant 0 : i32
    %c0_i32_0 = arith.constant 0 : i32
    return %arg0, %c0_i32 : i32, i32
  }
  func.func @transform_2(%arg0: i32) -> (i32, i32) {
    %c0_i32 = arith.constant 0 : i32
    %c0_i32_0 = arith.constant 0 : i32
    return %arg0, %c0_i32 : i32, i32
  }
  func.func @transform_3(%arg0: i32) -> (i32, i32) {
    %c0_i32 = arith.constant 0 : i32
    %c0_i32_0 = arith.constant 0 : i32
    %c0_i32_1 = arith.constant 0 : i32
    return %c0_i32, %c0_i32_0 : i32, i32
  }
  func.func @transform_4(%arg0: i32) -> (i32, i32) {
    %c0_i32 = arith.constant 0 : i32
    %c0_i32_0 = arith.constant 0 : i32
    return %arg0, %c0_i32 : i32, i32
  }
}

module attributes {stable_mosaic.version = 11 : i64} {
  func.func @gat_layer_kernel(%arg0: i32, %arg1: memref<32x32xf32, #tpu.memory_space<vmem>>, %arg2: memref<8x32xf32, #tpu.memory_space<vmem>>, %arg3: memref<8x32xf32, #tpu.memory_space<vmem>>, %arg4: memref<33x34xf32, #tpu.memory_space<vmem>>, %arg5: memref<8x32xf32, #tpu.memory_space<vmem>>) attributes {dimension_semantics = [#tpu.dimension_semantics<parallel>], iteration_bounds = array<i64: 4>, scalar_prefetch = 0 : i64, scratch_operands = 0 : i64, tpu.core_type = #tpu.core_type<tc>, window_params = [{pipeline_mode = #tpu.pipeline_mode<synchronous>, transform_indices = @transform_0, window_bounds = array<i64: 32, 32>}, {transform_indices = @transform_1, window_bounds = array<i64: 8, 32>}, {transform_indices = @transform_2, window_bounds = array<i64: 8, 32>}, {pipeline_mode = #tpu.pipeline_mode<synchronous>, transform_indices = @transform_3, window_bounds = array<i64: 33, 34>}, {transform_indices = @transform_4, window_bounds = array<i64: 8, 32>}]} {
    %c0 = arith.constant 0 : index
    %c0_0 = arith.constant 0 : index
    %0 = vector.load %arg4[%c0, %c0_0] : memref<33x34xf32, #tpu.memory_space<vmem>>, vector<33x34xf32>
    %1 = vector.extract_strided_slice %0 {offsets = [0, 0], sizes = [32, 32], strides = [1, 1]} : vector<33x34xf32> to vector<32x32xf32>
    %2 = vector.extract_strided_slice %0 {offsets = [0, 32], sizes = [32, 2], strides = [1, 1]} : vector<33x34xf32> to vector<32x2xf32>
    %3 = vector.extract_strided_slice %0 {offsets = [32, 0], sizes = [1, 32], strides = [1, 1]} : vector<33x34xf32> to vector<1x32xf32>
    %c0_1 = arith.constant 0 : index
    %c0_2 = arith.constant 0 : index
    %4 = vector.load %arg1[%c0_1, %c0_2] : memref<32x32xf32, #tpu.memory_space<vmem>>, vector<32x32xf32>
    %c0_3 = arith.constant 0 : index
    %c0_4 = arith.constant 0 : index
    %5 = vector.load %arg2[%c0_3, %c0_4] : memref<8x32xf32, #tpu.memory_space<vmem>>, vector<8x32xf32>
    %cst = arith.constant dense<0.000000e+00> : vector<32x32xf32>
    %6 = tpu.matmul %4, %1, %cst {dimension_numbers = #tpu.dot_dimension_numbers<[1], [0], [0], [1], [0, 0, 1, 1], [], []>} : vector<32x32xf32>, vector<32x32xf32>, vector<32x32xf32> -> vector<32x32xf32>
    %7 = vector.extract_strided_slice %2 {offsets = [0, 0], sizes = [32, 1], strides = [1, 1]} : vector<32x2xf32> to vector<32x1xf32>
    %cst_5 = arith.constant dense<0.000000e+00> : vector<32x1xf32>
    %8 = tpu.matmul %4, %7, %cst_5 {dimension_numbers = #tpu.dot_dimension_numbers<[1], [0], [0], [1], [0, 0, 1, 1], [], []>} : vector<32x32xf32>, vector<32x1xf32>, vector<32x1xf32> -> vector<32x1xf32>
    %9 = vector.extract_strided_slice %2 {offsets = [0, 1], sizes = [32, 1], strides = [1, 1]} : vector<32x2xf32> to vector<32x1xf32>
    %cst_6 = arith.constant dense<0.000000e+00> : vector<8x1xf32>
    %10 = tpu.matmul %5, %9, %cst_6 {dimension_numbers = #tpu.dot_dimension_numbers<[1], [0], [0], [1], [0, 0, 1, 1], [], []>} : vector<8x32xf32>, vector<32x1xf32>, vector<8x1xf32> -> vector<8x1xf32>
    %11 = tpu.transpose %8, [1, 0] : vector<32x1xf32> -> vector<1x32xf32>
    %12 = vector.broadcast %10 : vector<8x1xf32> to vector<8x32xf32>
    %13 = vector.broadcast %11 : vector<1x32xf32> to vector<8x32xf32>
    %14 = arith.addf %12, %13 : vector<8x32xf32>
    %cst_7 = arith.constant 0.000000e+00 : f32
    %15 = vector.broadcast %cst_7 : f32 to vector<8x32xf32>
    %16 = arith.cmpf ogt, %14, %15 : vector<8x32xf32>
    %cst_8 = arith.constant 2.000000e-01 : f32
    %17 = vector.broadcast %cst_8 : f32 to vector<8x32xf32>
    %18 = arith.mulf %17, %14 : vector<8x32xf32>
    %19 = arith.select %16, %14, %18 : vector<8x32xi1>, vector<8x32xf32>
    %c0_9 = arith.constant 0 : index
    %c0_10 = arith.constant 0 : index
    %20 = vector.load %arg3[%c0_9, %c0_10] : memref<8x32xf32, #tpu.memory_space<vmem>>, vector<8x32xf32>
    %21 = arith.addf %19, %20 : vector<8x32xf32>
    %cst_11 = arith.constant dense<0xFF800000> : vector<8xf32>
    %22 = vector.multi_reduction <maximumf>, %21, %cst_11 [1] : vector<8x32xf32> to vector<8xf32>
    %23 = vector.shape_cast %22 : vector<8xf32> to vector<8x1xf32>
    %24 = vector.broadcast %23 : vector<8x1xf32> to vector<8x32xf32>
    %25 = arith.subf %21, %24 : vector<8x32xf32>
    %26 = math.exp %25 : vector<8x32xf32>
    %cst_12 = arith.constant dense<0.000000e+00> : vector<8xf32>
    %27 = vector.multi_reduction <add>, %26, %cst_12 [1] : vector<8x32xf32> to vector<8xf32>
    %28 = vector.shape_cast %27 : vector<8xf32> to vector<8x1xf32>
    %29 = tpu.reciprocal %28 {approx = true} : vector<8x1xf32> -> vector<8x1xf32>
    %30 = vector.broadcast %29 : vector<8x1xf32> to vector<8x32xf32>
    %31 = arith.mulf %26, %30 : vector<8x32xf32>
    %cst_13 = arith.constant dense<0.000000e+00> : vector<8x32xf32>
    %32 = tpu.matmul %31, %6, %cst_13 {dimension_numbers = #tpu.dot_dimension_numbers<[1], [0], [0], [1], [0, 0, 1, 1], [], []>} : vector<8x32xf32>, vector<32x32xf32>, vector<8x32xf32> -> vector<8x32xf32>
    %33 = vector.broadcast %3 : vector<1x32xf32> to vector<8x32xf32>
    %34 = arith.addf %32, %33 : vector<8x32xf32>
    %c0_14 = arith.constant 0 : index
    %c0_15 = arith.constant 0 : index
    %35 = vector.load %arg5[%c0_14, %c0_15] : memref<8x32xf32, #tpu.memory_space<vmem>>, vector<8x32xf32>
    tpu.vector_store %arg5[%c0_14, %c0_15], %34 {strides = array<i32>} : memref<8x32xf32, #tpu.memory_space<vmem>>, vector<8x32xf32>,
    return
  }
  func.func @transform_0(%arg0: i32) -> (i32, i32) {
    %c0_i32 = arith.constant 0 : i32
    %c0_i32_0 = arith.constant 0 : i32
    %c0_i32_1 = arith.constant 0 : i32
    return %c0_i32, %c0_i32_0 : i32, i32
  }
  func.func @transform_1(%arg0: i32) -> (i32, i32) {
    %c0_i32 = arith.constant 0 : i32
    %c0_i32_0 = arith.constant 0 : i32
    return %arg0, %c0_i32 : i32, i32
  }
  func.func @transform_2(%arg0: i32) -> (i32, i32) {
    %c0_i32 = arith.constant 0 : i32
    %c0_i32_0 = arith.constant 0 : i32
    return %arg0, %c0_i32 : i32, i32
  }
  func.func @transform_3(%arg0: i32) -> (i32, i32) {
    %c0_i32 = arith.constant 0 : i32
    %c0_i32_0 = arith.constant 0 : i32
    %c0_i32_1 = arith.constant 0 : i32
    return %c0_i32, %c0_i32_0 : i32, i32
  }
  func.func @transform_4(%arg0: i32) -> (i32, i32) {
    %c0_i32 = arith.constant 0 : i32
    %c0_i32_0 = arith.constant 0 : i32
    return %arg0, %c0_i32 : i32, i32
  }
}

module attributes {stable_mosaic.version = 11 : i64} {
  func.func @pred_loss_kernel(%arg0: i32, %arg1: memref<8x32xf32, #tpu.memory_space<vmem>>, %arg2: memref<33x32xf32, #tpu.memory_space<vmem>>, %arg3: memref<33x128xf32, #tpu.memory_space<vmem>>, %arg4: memref<8x128xf32, #tpu.memory_space<vmem>>, %arg5: memref<8x1xf32, #tpu.memory_space<vmem>>, %arg6: memref<8x128xf32, #tpu.memory_space<vmem>>, %arg7: memref<1x1xf32, #tpu.memory_space<vmem>>, %arg8: memref<1x1xf32, #tpu.memory_space<vmem>>, %arg9: memref<1x1xf32, #tpu.memory_space<vmem>>) attributes {dimension_semantics = [#tpu.dimension_semantics<arbitrary>], iteration_bounds = array<i64: 4>, scalar_prefetch = 0 : i64, scratch_operands = 2 : i64, tpu.core_type = #tpu.core_type<tc>, window_params = [{transform_indices = @transform_0, window_bounds = array<i64: 8, 32>}, {pipeline_mode = #tpu.pipeline_mode<synchronous>, transform_indices = @transform_1, window_bounds = array<i64: 33, 32>}, {pipeline_mode = #tpu.pipeline_mode<synchronous>, transform_indices = @transform_2, window_bounds = array<i64: 33, 128>}, {transform_indices = @transform_3, window_bounds = array<i64: 8, 128>}, {transform_indices = @transform_4, window_bounds = array<i64: 8, 1>}, {transform_indices = @transform_5, window_bounds = array<i64: 8, 128>}, {pipeline_mode = #tpu.pipeline_mode<synchronous>, transform_indices = @transform_6, window_bounds = array<i64: 1, 1>}]} {
    %c0_i32 = arith.constant 0 : i32
    %0 = arith.cmpi eq, %arg0, %c0_i32 : i32
    %1 = arith.extui %0 : i1 to i32
    %c0_i32_0 = arith.constant 0 : i32
    %2 = arith.cmpi ne, %1, %c0_i32_0 : i32
    scf.if %2 {
      %cst_30 = arith.constant 0.000000e+00 : f32
      %61 = vector.broadcast %cst_30 : f32 to vector<1x1xf32>
      %c0_31 = arith.constant 0 : index
      %c0_32 = arith.constant 0 : index
      %62 = vector.load %arg8[%c0_31, %c0_32] : memref<1x1xf32, #tpu.memory_space<vmem>>, vector<1x1xf32>
      tpu.vector_store %arg8[%c0_31, %c0_32], %61 {strides = array<i32>} : memref<1x1xf32, #tpu.memory_space<vmem>>, vector<1x1xf32>,
      %cst_33 = arith.constant 0.000000e+00 : f32
      %63 = vector.broadcast %cst_33 : f32 to vector<1x1xf32>
      %c0_34 = arith.constant 0 : index
      %c0_35 = arith.constant 0 : index
      %64 = vector.load %arg9[%c0_34, %c0_35] : memref<1x1xf32, #tpu.memory_space<vmem>>, vector<1x1xf32>
      tpu.vector_store %arg9[%c0_34, %c0_35], %63 {strides = array<i32>} : memref<1x1xf32, #tpu.memory_space<vmem>>, vector<1x1xf32>,
    } else {
    }
    %c0 = arith.constant 0 : index
    %c0_1 = arith.constant 0 : index
    %3 = vector.load %arg2[%c0, %c0_1] : memref<33x32xf32, #tpu.memory_space<vmem>>, vector<33x32xf32>
    %4 = vector.extract_strided_slice %3 {offsets = [0, 0], sizes = [32, 32], strides = [1, 1]} : vector<33x32xf32> to vector<32x32xf32>
    %5 = vector.extract_strided_slice %3 {offsets = [32, 0], sizes = [1, 32], strides = [1, 1]} : vector<33x32xf32> to vector<1x32xf32>
    %c0_2 = arith.constant 0 : index
    %c0_3 = arith.constant 0 : index
    %6 = vector.load %arg3[%c0_2, %c0_3] : memref<33x128xf32, #tpu.memory_space<vmem>>, vector<33x128xf32>
    %7 = vector.extract_strided_slice %6 {offsets = [0, 0], sizes = [32, 128], strides = [1, 1]} : vector<33x128xf32> to vector<32x128xf32>
    %8 = vector.extract_strided_slice %6 {offsets = [32, 0], sizes = [1, 128], strides = [1, 1]} : vector<33x128xf32> to vector<1x128xf32>
    %c0_4 = arith.constant 0 : index
    %c0_5 = arith.constant 0 : index
    %9 = vector.load %arg1[%c0_4, %c0_5] : memref<8x32xf32, #tpu.memory_space<vmem>>, vector<8x32xf32>
    %cst = arith.constant dense<0.000000e+00> : vector<8x32xf32>
    %10 = tpu.matmul %9, %4, %cst {dimension_numbers = #tpu.dot_dimension_numbers<[1], [0], [0], [1], [0, 0, 1, 1], [], []>} : vector<8x32xf32>, vector<32x32xf32>, vector<8x32xf32> -> vector<8x32xf32>
    %11 = vector.broadcast %5 : vector<1x32xf32> to vector<8x32xf32>
    %12 = arith.addf %10, %11 : vector<8x32xf32>
    %cst_6 = arith.constant 0.000000e+00 : f32
    %13 = vector.broadcast %cst_6 : f32 to vector<8x32xf32>
    %14 = arith.maximumf %12, %13 : vector<8x32xf32>
    %cst_7 = arith.constant dense<0.000000e+00> : vector<8x128xf32>
    %15 = tpu.matmul %14, %7, %cst_7 {dimension_numbers = #tpu.dot_dimension_numbers<[1], [0], [0], [1], [0, 0, 1, 1], [], []>} : vector<8x32xf32>, vector<32x128xf32>, vector<8x128xf32> -> vector<8x128xf32>
    %16 = vector.broadcast %8 : vector<1x128xf32> to vector<8x128xf32>
    %17 = arith.addf %15, %16 : vector<8x128xf32>
    %c0_8 = arith.constant 0 : index
    %c0_9 = arith.constant 0 : index
    %18 = vector.load %arg6[%c0_8, %c0_9] : memref<8x128xf32, #tpu.memory_space<vmem>>, vector<8x128xf32>
    tpu.vector_store %arg6[%c0_8, %c0_9], %17 {strides = array<i32>} : memref<8x128xf32, #tpu.memory_space<vmem>>, vector<8x128xf32>,
    %c0_10 = arith.constant 0 : index
    %c0_11 = arith.constant 0 : index
    %19 = vector.load %arg4[%c0_10, %c0_11] : memref<8x128xf32, #tpu.memory_space<vmem>>, vector<8x128xf32>
    %c0_12 = arith.constant 0 : index
    %c0_13 = arith.constant 0 : index
    %20 = vector.load %arg5[%c0_12, %c0_13] : memref<8x1xf32, #tpu.memory_space<vmem>>, vector<8x1xf32>
    %21 = tpu.iota {dimensions = array<i32: 1>} : vector<8x128xi32>
    %c4_i32 = arith.constant 4 : i32
    %22 = vector.broadcast %c4_i32 : i32 to vector<8x128xi32>
    %23 = arith.cmpi slt, %21, %22 : vector<8x128xi32>
    %cst_14 = arith.constant 1.000000e+00 : f32
    %cst_15 = arith.constant 0.000000e+00 : f32
    %24 = vector.broadcast %cst_14 : f32 to vector<8x128xf32>
    %25 = vector.broadcast %cst_15 : f32 to vector<8x128xf32>
    %26 = arith.select %23, %24, %25 : vector<8x128xi1>, vector<8x128xf32>
    %27 = vector.broadcast %20 : vector<8x1xf32> to vector<8x128xf32>
    %28 = arith.mulf %26, %27 : vector<8x128xf32>
    %cst_16 = arith.constant 0.000000e+00 : f32
    %29 = vector.broadcast %cst_16 : f32 to vector<8x128xf32>
    %30 = arith.maximumf %17, %29 : vector<8x128xf32>
    %31 = arith.mulf %17, %19 : vector<8x128xf32>
    %32 = arith.subf %30, %31 : vector<8x128xf32>
    %33 = math.absf %17 : vector<8x128xf32>
    %cst_17 = arith.constant 0.000000e+00 : f32
    %34 = vector.broadcast %cst_17 : f32 to vector<8x128xf32>
    %35 = arith.subf %34, %33 : vector<8x128xf32>
    %36 = math.exp %35 : vector<8x128xf32>
    %cst_18 = arith.constant 1.000000e+00 : f32
    %37 = vector.broadcast %cst_18 : f32 to vector<8x128xf32>
    %38 = arith.addf %37, %36 : vector<8x128xf32>
    %39 = math.log %38 : vector<8x128xf32>
    %40 = arith.addf %32, %39 : vector<8x128xf32>
    %c0_19 = arith.constant 0 : index
    %c0_20 = arith.constant 0 : index
    %41 = vector.load %arg8[%c0_19, %c0_20] : memref<1x1xf32, #tpu.memory_space<vmem>>, vector<1x1xf32>
    %42 = arith.mulf %40, %28 : vector<8x128xf32>
    %43 = vector.shape_cast %42 : vector<8x128xf32> to vector<1x8x128xf32>
    %cst_21 = arith.constant dense<0.000000e+00> : vector<1xf32>
    %44 = vector.multi_reduction <add>, %43, %cst_21 [1, 2] : vector<1x8x128xf32> to vector<1xf32>
    %45 = vector.shape_cast %44 : vector<1xf32> to vector<1x1x1xf32>
    %46 = vector.extract %45[0, 0, 0] : f32 from vector<1x1x1xf32>
    %47 = vector.broadcast %46 : f32 to vector<1x1xf32>
    %48 = arith.addf %41, %47 : vector<1x1xf32>
    %c0_22 = arith.constant 0 : index
    %c0_23 = arith.constant 0 : index
    %49 = vector.load %arg8[%c0_22, %c0_23] : memref<1x1xf32, #tpu.memory_space<vmem>>, vector<1x1xf32>
    tpu.vector_store %arg8[%c0_22, %c0_23], %48 {strides = array<i32>} : memref<1x1xf32, #tpu.memory_space<vmem>>, vector<1x1xf32>,
    %c0_24 = arith.constant 0 : index
    %c0_25 = arith.constant 0 : index
    %50 = vector.load %arg9[%c0_24, %c0_25] : memref<1x1xf32, #tpu.memory_space<vmem>>, vector<1x1xf32>
    %51 = vector.shape_cast %20 : vector<8x1xf32> to vector<1x8x1xf32>
    %cst_26 = arith.constant dense<0.000000e+00> : vector<1xf32>
    %52 = vector.multi_reduction <add>, %51, %cst_26 [1, 2] : vector<1x8x1xf32> to vector<1xf32>
    %53 = vector.shape_cast %52 : vector<1xf32> to vector<1x1x1xf32>
    %54 = vector.extract %53[0, 0, 0] : f32 from vector<1x1x1xf32>
    %55 = vector.broadcast %54 : f32 to vector<1x1xf32>
    %56 = arith.addf %50, %55 : vector<1x1xf32>
    %c0_27 = arith.constant 0 : index
    %c0_28 = arith.constant 0 : index
    %57 = vector.load %arg9[%c0_27, %c0_28] : memref<1x1xf32, #tpu.memory_space<vmem>>, vector<1x1xf32>
    tpu.vector_store %arg9[%c0_27, %c0_28], %56 {strides = array<i32>} : memref<1x1xf32, #tpu.memory_space<vmem>>, vector<1x1xf32>,
    %c3_i32 = arith.constant 3 : i32
    %58 = arith.cmpi eq, %arg0, %c3_i32 : i32
    %59 = arith.extui %58 : i1 to i32
    %c0_i32_29 = arith.constant 0 : i32
    %60 = arith.cmpi ne, %59, %c0_i32_29 : i32
    scf.if %60 {
      %c0_30 = arith.constant 0 : index
      %c0_31 = arith.constant 0 : index
      %61 = vector.load %arg8[%c0_30, %c0_31] : memref<1x1xf32, #tpu.memory_space<vmem>>, vector<1x1xf32>
      %c0_32 = arith.constant 0 : index
      %c0_33 = arith.constant 0 : index
      %62 = vector.load %arg9[%c0_32, %c0_33] : memref<1x1xf32, #tpu.memory_space<vmem>>, vector<1x1xf32>
      %cst_34 = arith.constant 4.000000e+00 : f32
      %63 = vector.broadcast %cst_34 : f32 to vector<1x1xf32>
      %64 = arith.mulf %62, %63 : vector<1x1xf32>
      %65 = arith.divf %61, %64 : vector<1x1xf32>
      %c0_35 = arith.constant 0 : index
      %c0_36 = arith.constant 0 : index
      %66 = vector.load %arg7[%c0_35, %c0_36] : memref<1x1xf32, #tpu.memory_space<vmem>>, vector<1x1xf32>
      tpu.vector_store %arg7[%c0_35, %c0_36], %65 {strides = array<i32>} : memref<1x1xf32, #tpu.memory_space<vmem>>, vector<1x1xf32>,
    } else {
    }
    return
  }
  func.func @transform_0(%arg0: i32) -> (i32, i32) {
    %c0_i32 = arith.constant 0 : i32
    %c0_i32_0 = arith.constant 0 : i32
    return %arg0, %c0_i32 : i32, i32
  }
  func.func @transform_1(%arg0: i32) -> (i32, i32) {
    %c0_i32 = arith.constant 0 : i32
    %c0_i32_0 = arith.constant 0 : i32
    %c0_i32_1 = arith.constant 0 : i32
    return %c0_i32, %c0_i32_0 : i32, i32
  }
  func.func @transform_2(%arg0: i32) -> (i32, i32) {
    %c0_i32 = arith.constant 0 : i32
    %c0_i32_0 = arith.constant 0 : i32
    %c0_i32_1 = arith.constant 0 : i32
    return %c0_i32, %c0_i32_0 : i32, i32
  }
  func.func @transform_3(%arg0: i32) -> (i32, i32) {
    %c0_i32 = arith.constant 0 : i32
    %c0_i32_0 = arith.constant 0 : i32
    return %arg0, %c0_i32 : i32, i32
  }
  func.func @transform_4(%arg0: i32) -> (i32, i32) {
    %c0_i32 = arith.constant 0 : i32
    %c0_i32_0 = arith.constant 0 : i32
    return %arg0, %c0_i32 : i32, i32
  }
  func.func @transform_5(%arg0: i32) -> (i32, i32) {
    %c0_i32 = arith.constant 0 : i32
    %c0_i32_0 = arith.constant 0 : i32
    return %arg0, %c0_i32 : i32, i32
  }
  func.func @transform_6(%arg0: i32) -> (i32, i32) {
    %c0_i32 = arith.constant 0 : i32
    %c0_i32_0 = arith.constant 0 : i32
    %c0_i32_1 = arith.constant 0 : i32
    return %c0_i32, %c0_i32_0 : i32, i32
  }
}

</mosaic_0001>

<bundles_post_ra>
// kernel: gat_client_forward.3
= control target key start
LH: loop header
LB: loop body
LE: loop exit
PB: predicated region body
PF: predicated region fallthrough
CT: control target
= control target key end

     0   :  { %s863_s15 = smov 0   ;;  %s928_s0 = inlined_call_operand.vmem [shape: f32[32,16], index: 0, kind: input, shape index: {}, may-alias: {0,1}]   ;;  %s929_s1 = inlined_call_operand.vmem [shape: f32[32,16], index: 1, kind: input, shape index: {}, may-alias: {0,1}]   ;;  %s930_s2 = inlined_call_operand.vmem [shape: f32[32,32], index: 2, kind: input, shape index: {}]   ;;  %s931_s3 = inlined_call_operand.vmem [shape: f32[17,34], index: 3, kind: input, shape index: {}]   ;;  %s932_s4 = inlined_call_operand.vmem [shape: f32[32,32], index: 4, kind: output, shape index: {}]  }
   0x1 LB: > { %s695_s16 = sadd.s32 4294967295, %s830_s15   ;;  %p699_p0 = scmp.ge.s32.totalorder %s830_s15, 1  ;;  %s830_s15 = sphi %s863_s15, %s14_s15  }
   0x2   : > { %p170_p1 = scmp.lt.s32.totalorder %s830_s15, 5 }
   0x4   : > { %p171_p2 = pnand %p699_p0, %p170_p1 }
   0x5   : > { %v210_v0 = vld [vmem:[%s931_s3] sm:$0xff] (!%p171_p2)  ;;  %v211_v1 = vld [vmem:[%s931_s3 + $0x8] sm:$0xff] (!%p171_p2)  ;;  %vm218_vm0 = vcmask (!%p171_p2), 130048   ;;  %s832_s23 = smov (!%p171_p2), 95   ;;  %v215_v6 = vld [vmem:[%s928_s0 + $0x10] sm:$0xff] (!%p171_p2)  ;;  %v833_v7 = vmov (!%p171_p2), 0.0|0.0   ;;  %v525_v32 = vlaneseq (!%p171_p2) }
   0x6   : > { %174 = sbr.rel (%p171_p2) target bundleno = 1066 (0x42a), region = 36  ;;  %v213_v2 = vld [vmem:[%s928_s0] sm:$0xff] (!%p171_p2)  ;;  %v806_v3 = vpack.i.bf16 (!%p171_p2), %v211_v1, %v210_v0  ;;  %v775_v4 = vpack.c.bf16 (!%p171_p2), %v211_v1, %v210_v0  ;;  %v214_v5 = vld [vmem:[%s928_s0 + $0x8] sm:$0xff] (!%p171_p2)  ;;  %s834_s28 = smov (!%p171_p2), 96   ;;  %v216_v8 = vld [vmem:[%s928_s0 + $0x18] sm:$0xff] (!%p171_p2)  ;;  %vm835_vm1 = vmmov (!%p171_p2), 0  }
   0x7   : > { %741 = vmatprep.mubr.msk.f32.mxu0 (!%p171_p2), %vm218_vm0, %v213_v2  ;;  %751 = vmatprep.mubr.msk.f32.mxu1 (!%p171_p2), %vm218_vm0, %v213_v2  ;;  %v836_v9 = vmov (!%p171_p2), 0.0   ;;  %v837_v10 = vmov (!%p171_p2), 0   ;;  %p198_p3 = scmp.lt.s32.totalorder (!%p171_p2), %s695_s16, 3  ;;  %v526_v33 = vshrl.u32 (!%p171_p2), %v525_v32, 7  ;;  %vm535_vm3 = vcmask (!%p171_p2), 261120  }
   0x8   : > { %807 = vrot.lane.b32.xlu0 (!%p171_p2), %v806_v3, %s832_s23  ;;  %776 = vmatprep.subr.bf16.mxu0 (!%p171_p2), %v775_v4  ;;  %v712_v52 = vld [vmem:[%s931_s3 + $0x10] ss:$0 sm:$0xff] (!%p171_p2) }
   0x9   : > { %778 = vmatpush3.bf16.msra.mxu0 (!%p171_p2), %v775_v4  ;;  %816 = vset.pattern.permute.xlu1 (!%p171_p2), %v837_v10  ;;  %v527_v35 = vsub.s32 (!%p171_p2), 0, %v526_v33 }
   0xa   : > { %783 = vmatprep.subr.bf16.mxu0 (!%p171_p2), %v833_v7  ;;  %817 = vset.pattern.permute.xlu0 (!%p171_p2), %v837_v10 }
   0xc   : > { %812 = vrot.lane.b32.xlu0 (!%p171_p2), %v806_v3, %s834_s28  ;;  %742 = vmatmul.mubr.msk.f32.vlgmr.msra.gmra.mrb[0].mxu0 (!%p171_p2), %vm218_vm0, %v214_v5 }
   0xd   : > { %744 = vmatprep.mubr.msk.f32.mxu0 %vm218_vm0, %v215_v6  ;;  %s934_s16 = smov (!%p198_p3, %s695_s16), 3 }
   0xe   : > { %s899_s5 = sshll.u32 %s934_s16, 3 }
   0xf   : > { %s201_s8 = scalar_lea.vmem %s929_s1, %s899_s5  ;;  %s205_s11 = scalar_lea.vmem %s930_s2, %s899_s5 }
  0x10   : > { %745 = vmatmul.mubr.msk.f32.gmra.mrb[2].mxu0 %vm218_vm0, %v216_v8  ;;  %v217_v16 = vld [vmem:[%s201_s8] sm:$0xff]  ;;  %s209_s17 = scalar_lea.vmem %s932_s4, %s899_s5 }
  0x11   : > { %761 = vmatprep.mubr.msk.f32.mxu0 %vm835_vm1, %v836_v9  ;;  %v533_v40 = vld [vmem:[%s205_s11] sm:$0xff] }
  0x7a   : > { %v808_v11 = vpop.permute.xlu0 %807 }
  0x7b   : > { %v810_v12 = vunpack.i.h.bf16 %v808_v11  ;;  %v809_v13 = vunpack.i.l.bf16 %v808_v11 }
  0x7d   : > { %v784_v14 = vpack.c.bf16 %v810_v12, %v809_v13 }
  0x7e   : > { %v813_v15 = vpop.permute.xlu0 %812 }
  0x7f   : > { %785 = vmatpush3.bf16.msra.mxu0 %v784_v14  ;;  %v815_v17 = vunpack.i.h.bf16 %v813_v15  ;;  %v814_v18 = vunpack.i.l.bf16 %v813_v15 }
  0x81   : > { %v779_v19 = vpack.c.bf16 %v815_v17, %v814_v18 }
  0x82   : > { %762 = vmatmul.mubr.msk.f32.vlgmr.msra.gmra.mrb[4].mxu0 %vm218_vm0, %v217_v16 }
  0x83   : > { %780 = vmatprep.subr.bf16.mxu1 %v779_v19 }
  0x84   : > { %782 = vmatpush3.bf16.msra.mxu1 %v779_v19 }
  0x85   : > { %786 = vmatprep.subr.bf16.mxu1 %v833_v7 }
  0x87   : > { %752 = vmatmul.mubr.msk.f32.vlgmr.msra.gmra.mrb[0].mxu1 %vm218_vm0, %v214_v5 }
  0x88   : > { %754 = vmatprep.mubr.msk.f32.mxu1 %vm218_vm0, %v215_v6 }
  0x8b   : > { %755 = vmatmul.mubr.msk.f32.gmra.mrb[2].mxu1 %vm218_vm0, %v216_v8 }
  0x8c   : > { %772 = vmatprep.mubr.msk.f32.mxu1 %vm835_vm1, %v836_v9 }
  0xdf   : > { %v743_v20 = vpop.f32.mrb[0].mxu0 }
  0xe0   : > { %v297_v21 = vpop.f32.mrb[1].mxu0 }
  0xe1   : > { %v787_v22 = vpack.c.bf16 %v743_v20, %v297_v21 }
  0xe3   : > { %v746_v23 = vpop.f32.mrb[2].mxu0  ;;  %788 = vmatpush3.bf16.msra.mxu1 %v787_v22 }
  0xe4   : > { %v307_v24 = vpop.f32.mrb[3].mxu0  ;;  %789 = vmatprep.subr.bf16.mxu1 %v833_v7 }
  0xe5   : > { %v790_v25 = vpack.c.bf16 %v746_v23, %v307_v24 }
  0xe7   : > { %791 = vmatpush3.bf16.msra.mxu1 %v790_v25 }
 0x155   : > { %v484_v26 = vpop.f32.mrb[4].mxu0 }
 0x156   : > { %522 = vperm.xlu1 %816, %v484_v26   ;;  %v763_v27 = vpop.f32.mrb[5].mxu0 }
 0x15a   : > { %v753_v28 = vpop.f32.mrb[0].mxu1 }
 0x15b   : > { %v390_v29 = vpop.f32.mrb[1].mxu1 }
 0x15e   : > { %v756_v30 = vpop.f32.mrb[2].mxu1 }
 0x15f   : > { %v400_v31 = vpop.f32.mrb[3].mxu1 }
 0x17f   : > { %488 = vxpose.xlu1.b32.start [1/4] (short) (narrow) %v390_v29, 8 }
 0x183   : > { %489 = vxpose.xlu1.b32.cont [2/4] (short) (narrow) %v753_v28, 8 }
 0x187   : > { %490 = vxpose.xlu1.b32.cont [3/4] (short) (narrow) %v400_v31, 8 }
 0x18b   : > { %491 = vxpose.xlu1.b32.end [4/4] (short) (narrow) %v756_v30, 8 }
 0x1d5   : > { %v523_v34 = vpop.permute.xlu1 %522 }
 0x1ff   : > { %v504_v36 = vpop.trf.xlu1 }
 0x200   : > { %v528_v37 = vrot.slane %v504_v36, %v527_v35 }
 0x202   : > { %v529_v38 = vadd.f32 %v528_v37, %v523_v34 }
 0x204   : > { %v531_v39 = vmul.f32 0.2, %v529_v38  ;;  %vm530_vm2 = vcmp.gt.f32.partialorder %v529_v38, 0.0 }
 0x206   : > { %v532_v41 = vsel %vm530_vm2, %v529_v38, %v531_v39 }
 0x207   : > { %v534_v42 = vadd.f32 %v533_v40, %v532_v41 }
 0x209   : > { %v536_v43 = vsel %vm535_vm3, %v534_v42, -inf }
 0x20a   : > { %537 = vmax.xlane.f32.xlu0 %v536_v43 }
 0x297   : > { %v538_v44 = vpop.xlane.xlu0 %537 }
 0x298   : > { %v539_v45 = vsub.f32 %v534_v42, %v538_v44 }
 0x29a   : > { %v540_v46 = vmul.f32 1.442695, %v539_v45 }
 0x29c   : > { %818 = vpow2.f32 %v540_v46 }
 0x2a6   : > { %v819_v47 = vpop.eup %818 }
 0x2a7   : > { %v542_v48 = vsel %vm535_vm3, %v819_v47, 0.0 }
 0x2a8   : > { %543 = vadd.xlane.f32.xlu0 %v542_v48 }
 0x335   : > { %v544_v49 = vpop.xlane.xlu0 %543 }
 0x336   : > { %820 = vrcp.f32 %v544_v49 }
 0x340   : > { %v821_v50 = vpop.eup %820 }
 0x341   : > { %v546_v51 = vmul.f32 %v821_v50, %v819_v47 }
 0x343   : > { %773 = vmatmul.mubr.msk.f32.vlgmr.msra.gmra.mrb[4].mxu1 %vm535_vm3, %v546_v51 }
 0x416   : > { %v620_v53 = vpop.f32.mrb[4].mxu1 }
 0x417   : > { %v621_v54 = vadd.f32 %v712_v52, %v620_v53  ;;  %v774_v55 = vpop.f32.mrb[5].mxu1 }
 0x419   : > { %v625_v56 = vmul.f32 1.442695, %v621_v54  ;;  %vm624_vm4 = vcmp.gt.f32.partialorder %v621_v54, 0.0 }
 0x41b   : > { %822 = vpow2.f32 %v625_v56 }
 0x425   : > { %v823_v57 = vpop.eup %822 }
 0x426   : > { %v714_v58 = vadd.f32 -1.0, %v823_v57 }
 0x428   : > { %v628_v59 = vsel %vm624_vm4, %v621_v54, %v714_v58 }
 0x429   : > { %629 = vst.msk [vmem:[%s209_s17] sm:$0xff] %vm535_vm3, %v628_v59 }
 0x42a PF: > { %s14_s15 = sadd.s32 1, %s830_s15  }
 0x42b   : > { %p11_p4 = scmp.ge.s32.totalorder %s14_s15, 6  }
 0x42d   :  { %13 = sbr.rel (!%p11_p4) target bundleno = 1 (0x1), region = 69 }

// kernel: gat_client_forward.4
= control target key start
LH: loop header
LB: loop body
LE: loop exit
PB: predicated region body
PF: predicated region fallthrough
CT: control target
= control target key end

     0   :  { %s908_s15 = smov 0   ;;  %s979_s0 = inlined_call_operand.vmem [shape: f32[32,32], index: 0, kind: input, shape index: {}, may-alias: {0,1}]   ;;  %s980_s1 = inlined_call_operand.vmem [shape: f32[32,32], index: 1, kind: input, shape index: {}, may-alias: {0,1}]   ;;  %s981_s2 = inlined_call_operand.vmem [shape: f32[32,32], index: 2, kind: input, shape index: {}]   ;;  %s982_s3 = inlined_call_operand.vmem [shape: f32[33,34], index: 3, kind: input, shape index: {}]   ;;  %s983_s4 = inlined_call_operand.vmem [shape: f32[32,32], index: 4, kind: output, shape index: {}]  }
   0x1 LB: > { %s705_s16 = sadd.s32 4294967295, %s875_s15   ;;  %p709_p0 = scmp.ge.s32.totalorder %s875_s15, 1  ;;  %s875_s15 = sphi %s908_s15, %s14_s15  }
   0x2   : > { %p170_p1 = scmp.lt.s32.totalorder %s875_s15, 5 }
   0x4   : > { %p171_p2 = pnand %p709_p0, %p170_p1 }
   0x5   : > { %v210_v0 = vld [vmem:[%s982_s3] sm:$0xff] (!%p171_p2)  ;;  %v211_v1 = vld [vmem:[%s982_s3 + $0x8] sm:$0xff] (!%p171_p2)  ;;  %v212_v2 = vld [vmem:[%s982_s3 + $0x10] sm:$0xff] (!%p171_p2)  ;;  %vm220_vm0 = vcmask (!%p171_p2), 261120   ;;  %s877_s27 = smov (!%p171_p2), 96   ;;  %s878_s28 = smov (!%p171_p2), 95   ;;  %v541_v44 = vlaneseq (!%p171_p2) }
   0x6   : > { %174 = sbr.rel (%p171_p2) target bundleno = 1015 (0x3f7), region = 36  ;;  %v854_v3 = vpack.i.bf16 (!%p171_p2), %v211_v1, %v210_v0  ;;  %v213_v4 = vld [vmem:[%s982_s3 + $0x18] sm:$0xff] (!%p171_p2)  ;;  %v802_v5 = vpack.c.bf16 (!%p171_p2), %v211_v1, %v210_v0  ;;  %v215_v6 = vld [vmem:[%s979_s0] sm:$0xff] (!%p171_p2)  ;;  %v216_v9 = vld [vmem:[%s979_s0 + $0x8] sm:$0xff] (!%p171_p2)  ;;  %v879_v10 = vmov (!%p171_p2), 0.0|0.0   ;;  %vm880_vm1 = vmmov (!%p171_p2), 0  }
   0x7   : > { %v806_v7 = vpack.c.bf16 (!%p171_p2), %v213_v4, %v212_v2  ;;  %760 = vmatprep.mubr.msk.f32.mxu0 (!%p171_p2), %vm220_vm0, %v215_v6  ;;  %774 = vmatprep.mubr.msk.f32.mxu1 (!%p171_p2), %vm220_vm0, %v215_v6  ;;  %v859_v8 = vpack.i.bf16 (!%p171_p2), %v213_v4, %v212_v2  ;;  %v217_v11 = vld [vmem:[%s979_s0 + $0x10] sm:$0xff] (!%p171_p2)  ;;  %v218_v12 = vld [vmem:[%s979_s0 + $0x18] sm:$0xff] (!%p171_p2)  ;;  %v881_v13 = vmov (!%p171_p2), 0.0   ;;  %p198_p3 = scmp.lt.s32.totalorder (!%p171_p2), %s705_s16, 3  ;;  %v882_v31 = vmov (!%p171_p2), 0  }
   0x8   : > { %855 = vrot.lane.b32.xlu1 (!%p171_p2), %v854_v3, %s877_s27  ;;  %845 = vrot.lane.b32.xlu0 (!%p171_p2), %v854_v3, %s878_s28  ;;  %v542_v45 = vshrl.u32 (!%p171_p2), %v541_v44, 7  ;;  %v722_v0 = vld [vmem:[%s982_s3 + $0x20] ss:$0 sm:$0xff] (!%p171_p2) }
   0x9   : > { %803 = vmatprep.subr.bf16.mxu0 (!%p171_p2), %v802_v5  ;;  %864 = vset.pattern.permute.xlu0 (!%p171_p2), %v882_v31 }
   0xa   : > { %805 = vmatpush3.bf16.msra.mxu0 (!%p171_p2), %v802_v5  ;;  %v543_v46 = vsub.s32 (!%p171_p2), 0, %v542_v45 }
   0xb   : > { %807 = vmatprep.subr.bf16.mxu0 (!%p171_p2), %v806_v7 }
   0xc   : > { %860 = vrot.lane.b32.xlu1 (!%p171_p2), %v859_v8, %s877_s27  ;;  %850 = vrot.lane.b32.xlu0 (!%p171_p2), %v859_v8, %s878_s28 }
   0xd   : > { %s985_s16 = smov (!%p198_p3, %s705_s16), 3 }
   0xe   : > { %809 = vmatpush3.bf16.msra.mxu0 %v806_v7  ;;  %s950_s9 = sshll.u32 %s985_s16, 3 }
   0xf   : > { %818 = vmatprep.subr.bf16.mxu0 %v879_v10  ;;  %s201_s12 = scalar_lea.vmem %s980_s1, %s950_s9  ;;  %s205_s16 = scalar_lea.vmem %s981_s2, %s950_s9 }
  0x10   : > { %v219_v30 = vld [vmem:[%s201_s12] sm:$0xff]  ;;  %s209_s21 = scalar_lea.vmem %s983_s4, %s950_s9 }
  0x11   : > { %761 = vmatmul.mubr.msk.f32.vlgmr.msra.gmra.mrb[0].mxu0 %vm220_vm0, %v216_v9  ;;  %v549_v52 = vld [vmem:[%s205_s16] sm:$0xff] }
  0x12   : > { %763 = vmatprep.mubr.msk.f32.mxu0 %vm220_vm0, %v217_v11 }
  0x15   : > { %764 = vmatmul.mubr.msk.f32.gmra.mrb[2].mxu0 %vm220_vm0, %v218_v12 }
  0x16   : > { %788 = vmatprep.mubr.msk.f32.mxu0 %vm880_vm1, %v881_v13 }
  0x7a   : > { %v856_v14 = vpop.permute.xlu1 %855  ;;  %v846_v15 = vpop.permute.xlu0 %845 }
  0x7b   : > { %v858_v16 = vunpack.i.h.bf16 %v856_v14  ;;  %v857_v17 = vunpack.i.l.bf16 %v856_v14  ;;  %v848_v18 = vunpack.i.h.bf16 %v846_v15  ;;  %v847_v19 = vunpack.i.l.bf16 %v846_v15 }
  0x7d   : > { %v819_v20 = vpack.c.bf16 %v848_v18, %v847_v19  ;;  %v810_v21 = vpack.c.bf16 %v858_v16, %v857_v17 }
  0x7e   : > { %v861_v22 = vpop.permute.xlu1 %860  ;;  %v851_v23 = vpop.permute.xlu0 %850 }
  0x7f   : > { %v863_v24 = vunpack.i.h.bf16 %v861_v22  ;;  %v862_v25 = vunpack.i.l.bf16 %v861_v22  ;;  %811 = vmatprep.subr.bf16.mxu1 %v810_v21  ;;  %v853_v26 = vunpack.i.h.bf16 %v851_v23  ;;  %v852_v27 = vunpack.i.l.bf16 %v851_v23  ;;  %820 = vmatpush3.bf16.msra.mxu0 %v819_v20 }
  0x80   : > { %813 = vmatpush3.bf16.msra.mxu1 %v810_v21  ;;  %821 = vmatprep.subr.bf16.mxu0 %v879_v10 }
  0x81   : > { %v814_v28 = vpack.c.bf16 %v863_v24, %v862_v25  ;;  %v822_v29 = vpack.c.bf16 %v853_v26, %v852_v27 }
  0x83   : > { %815 = vmatprep.subr.bf16.mxu1 %v814_v28  ;;  %823 = vmatpush3.bf16.msra.mxu0 %v822_v29 }
  0x84   : > { %817 = vmatpush3.bf16.msra.mxu1 %v814_v28 }
  0x85   : > { %824 = vmatprep.subr.bf16.mxu1 %v879_v10 }
  0x86   : > { %789 = vmatmul.mubr.msk.f32.vlgmr.msra.gmra.mrb[4].mxu0 %vm220_vm0, %v219_v30 }
  0x87   : > { %775 = vmatmul.mubr.msk.f32.vlgmr.msra.gmra.mrb[0].mxu1 %vm220_vm0, %v216_v9 }
  0x88   : > { %777 = vmatprep.mubr.msk.f32.mxu1 %vm220_vm0, %v217_v11 }
  0x8b   : > { %778 = vmatmul.mubr.msk.f32.gmra.mrb[2].mxu1 %vm220_vm0, %v218_v12 }
  0x8c   : > { %799 = vmatprep.mubr.msk.f32.mxu1 %vm880_vm1, %v881_v13 }
  0xe4   : > { %v762_v32 = vpop.f32.mrb[0].mxu0 }
  0xe5   : > { %v299_v33 = vpop.f32.mrb[1].mxu0 }
  0xe6   : > { %v825_v34 = vpack.c.bf16 %v762_v32, %v299_v33 }
  0xe8   : > { %v765_v35 = vpop.f32.mrb[2].mxu0  ;;  %826 = vmatpush3.bf16.msra.mxu1 %v825_v34 }
  0xe9   : > { %v309_v36 = vpop.f32.mrb[3].mxu0  ;;  %827 = vmatprep.subr.bf16.mxu1 %v879_v10 }
  0xea   : > { %v828_v37 = vpack.c.bf16 %v765_v35, %v309_v36 }
  0xec   : > { %829 = vmatpush3.bf16.msra.mxu1 %v828_v37 }
 0x159   : > { %v500_v38 = vpop.f32.mrb[4].mxu0 }
 0x15a   : > { %v776_v39 = vpop.f32.mrb[0].mxu1  ;;  %v790_v40 = vpop.f32.mrb[5].mxu0  ;;  %538 = vperm.xlu0 %864, %v500_v38  }
 0x15b   : > { %v400_v41 = vpop.f32.mrb[1].mxu1 }
 0x15c   : > { %504 = vxpose.xlu1.b32.start [1/4] (short) (narrow) %v400_v41, 8 }
 0x15e   : > { %v779_v42 = vpop.f32.mrb[2].mxu1 }
 0x15f   : > { %v410_v43 = vpop.f32.mrb[3].mxu1 }
 0x160   : > { %505 = vxpose.xlu1.b32.cont [2/4] (short) (narrow) %v776_v39, 8 }
 0x164   : > { %506 = vxpose.xlu1.b32.cont [3/4] (short) (narrow) %v410_v43, 8 }
 0x168   : > { %507 = vxpose.xlu1.b32.end [4/4] (short) (narrow) %v779_v42, 8 }
 0x1d9   : > { %v539_v48 = vpop.permute.xlu0 %538 }
 0x1dc   : > { %v520_v47 = vpop.trf.xlu1 }
 0x1dd   : > { %v544_v49 = vrot.slane %v520_v47, %v543_v46 }
 0x1df   : > { %v545_v50 = vadd.f32 %v544_v49, %v539_v48 }
 0x1e1   : > { %vm546_vm2 = vcmp.gt.f32.partialorder %v545_v50, 0.0  ;;  %v547_v51 = vmul.f32 0.2, %v545_v50 }
 0x1e3   : > { %v548_v53 = vsel %vm546_vm2, %v545_v50, %v547_v51 }
 0x1e4   : > { %v550_v54 = vadd.f32 %v549_v52, %v548_v53 }
 0x1e6   : > { %v551_v55 = vsel %vm220_vm0, %v550_v54, -inf }
 0x1e7   : > { %552 = vmax.xlane.f32.xlu0 %v551_v55 }
 0x274   : > { %v553_v56 = vpop.xlane.xlu0 %552 }
 0x275   : > { %v554_v57 = vsub.f32 %v550_v54, %v553_v56 }
 0x277   : > { %v555_v58 = vmul.f32 1.442695, %v554_v57 }
 0x279   : > { %865 = vpow2.f32 %v555_v58 }
 0x283   : > { %v866_v59 = vpop.eup %865 }
 0x284   : > { %v557_v60 = vsel %vm220_vm0, %v866_v59, 0.0 }
 0x285   : > { %558 = vadd.xlane.f32.xlu0 %v557_v60 }
 0x312   : > { %v559_v61 = vpop.xlane.xlu0 %558 }
 0x313   : > { %867 = vrcp.f32 %v559_v61 }
 0x31d   : > { %v868_v62 = vpop.eup %867 }
 0x31e   : > { %v561_v63 = vmul.f32 %v868_v62, %v866_v59 }
 0x320   : > { %800 = vmatmul.mubr.msk.f32.vlgmr.msra.gmra.mrb[4].mxu1 %vm220_vm0, %v561_v63 }
 0x3f3   : > { %v635_v1 = vpop.f32.mrb[4].mxu1 }
 0x3f4   : > { %v636_v2 = vadd.f32 %v722_v0, %v635_v1  ;;  %v801_v3 = vpop.f32.mrb[5].mxu1 }
 0x3f6   : > { %639 = vst.msk [vmem:[%s209_s21] sm:$0xff] %vm220_vm0, %v636_v2 }
 0x3f7 PF: > { %s14_s15 = sadd.s32 1, %s875_s15  }
 0x3f8   : > { %p11_p4 = scmp.ge.s32.totalorder %s14_s15, 6  }
 0x3fa   :  { %13 = sbr.rel (!%p11_p4) target bundleno = 1 (0x1), region = 69 }

// kernel: gat_client_forward.5
= control target key start
LH: loop header
LB: loop body
LE: loop exit
PB: predicated region body
PF: predicated region fallthrough
CT: control target
= control target key end

     0   :  { %12 = vsyncpa [#allocation5], 0  ;;  %s792_s21 = smov 0   ;;  %s900_s0 = inlined_call_operand.vmem [shape: f32[32,32], index: 0, kind: input, shape index: {}]   ;;  %s901_s1 = inlined_call_operand.vmem [shape: f32[33,32], index: 1, kind: input, shape index: {}]   ;;  %s902_s2 = inlined_call_operand.vmem [shape: f32[33,128], index: 2, kind: input, shape index: {}]   ;;  %s903_s3 = inlined_call_operand.vmem [shape: f32[32,128], index: 3, kind: input, shape index: {}]   ;;  %s904_s4 = inlined_call_operand.vmem [shape: f32[32,1], index: 4, kind: input, shape index: {}]   ;;  %s905_s5 = inlined_call_operand.vmem [shape: f32[32,128], index: 5, kind: output, shape index: {0}]   ;;  %s906_s6 = inlined_call_operand.hbm [shape: f32[1,1], index: 6, kind: output, shape index: {1}]  }
   0x1 LB: > { %s798_s22 = sadd.s32 4294967295, %s749_s21   ;;  %p623_p0 = scmp.ge.s32.totalorder %s749_s21, 1  ;;  %s749_s21 = sphi %s792_s21, %s18_s21  }
   0x2   : > { %p228_p1 = scmp.lt.s32.totalorder %s749_s21, 5 }
   0x4   : > { %p229_p2 = pnand %p623_p0, %p228_p1 }
   0x5   : > { %p264_p3 = scmp.lt.s32.totalorder (!%p229_p2), %s798_s22, 3  ;;  %p628_p4 = scmp.ne.s32.totalorder (!%p229_p2), %s798_s22, 0 }
   0x6   : > { %232 = sbr.rel (%p229_p2) target bundleno = 754 (0x2f2), region = 40 }
   0xd   : > { %s265_s23 = scalar_select %p264_p3, %s798_s22, 3 }
   0xe   : > { %283 = sbr.rel (%p628_p4) target bundleno = 21 (0x15), region = 44  ;;  %vm284_vm0 = vcmask (!%p628_p4), 0   ;;  %v751_v0 = vmov (!%p628_p4), 0.0  }
   0xf   : > { %s804_s24 = sshll.u32 %s265_s23, 3  ;;  %285 = vst.msk [vmem:[#allocation2] sm:$0x1] (!%p628_p4), %vm284_vm0, %v751_v0  ;;  %286 = vst.msk [vmem:[#allocation3] sm:$0x1] (!%p628_p4), %vm284_vm0, %v751_v0 }
  0x10   : > { %s267_s27 = scalar_lea.vmem %s900_s0, %s804_s24  ;;  %s271_s30 = scalar_lea.vmem %s903_s3, %s804_s24 }
  0x11   : > { %s275_s9 = scalar_lea.vmem %s904_s4, %s804_s24  ;;  %s279_s12 = scalar_lea.vmem %s905_s5, %s804_s24 }
  0x15 PF: > { %v287_v1 = vld [vmem:[%s901_s1] sm:$0xff]  ;;  %v288_v2 = vld [vmem:[%s901_s1 + $0x8] sm:$0xff]  ;;  %v289_v3 = vld [vmem:[%s901_s1 + $0x10] sm:$0xff]  ;;  %v752_v4 = vmov 0.0|0.0   ;;  %vm753_vm1 = vmmov 0   ;;  %v754_v7 = vmov 0.0   ;;  %v457_v32 = vlaneseq }
  0x16   : > { %670 = vmatprep.subr.bf16.mxu0 %v752_v4  ;;  %v671_v5 = vpack.c.bf16 %v288_v2, %v287_v1  ;;  %v290_v6 = vld [vmem:[%s901_s1 + $0x18] sm:$0xff]  ;;  %656 = vmatprep.mubr.msk.f32.mxu0 %vm753_vm1, %v754_v7  ;;  %v292_v8 = vld [vmem:[%s902_s2] sm:$0xff]  ;;  %v293_v9 = vld [vmem:[%s902_s2 + $0x8] sm:$0xff]  ;;  %vm302_vm2 = vcmask 261120   ;;  %v755_v17 = vmov 0   ;;  %vm494_vm3 = vcmask 7168  }
  0x17   : > { %676 = vmatprep.subr.bf16.mxu1 %v752_v4  ;;  %667 = vmatprep.mubr.msk.f32.mxu1 %vm753_vm1, %v754_v7  ;;  %v674_v10 = vpack.c.bf16 %v290_v6, %v289_v3  ;;  %v677_v11 = vpack.c.bf16 %v293_v9, %v292_v8  ;;  %v297_v12 = vld [vmem:[%s267_s27] sm:$0xff]  ;;  %v294_v13 = vld [vmem:[%s902_s2 + $0x10] sm:$0xff]  ;;  %v295_v14 = vld [vmem:[%s902_s2 + $0x18] sm:$0xff]  ;;  %v458_v34 = vand.u32 127, %v457_v32  ;;  %vm491_vm5 = vcmask 0   ;;  %p633_p5 = scmp.ne.s32.totalorder %s798_s22, 3 }
  0x18   : > { %672 = vmatpush3.bf16.msra.mxu0 %v671_v5  ;;  %v680_v15 = vpack.c.bf16 %v295_v14, %v294_v13  ;;  %v456_v16 = vld [vmem:[%s275_s9] sm:$0xff]  ;;  %706 = vset.pattern.permute.xlu0 %v755_v17 }
  0x19   : > { %673 = vmatprep.subr.bf16.mxu0 %v752_v4  ;;  %678 = vmatpush3.bf16.msra.mxu1 %v677_v11  ;;  %v629_v18 = vld [vmem:[%s901_s1 + $0x20] ss:$0 sm:$0xff]  ;;  %v495_v23 = vsel %vm494_vm3, %v456_v16, 0.0  ;;  %vm459_vm4 = vcmp.lt.s32.totalorder %v458_v34, 4  ;;  %v493_v61 = vld [vmem:[#allocation3] sm:$0x1] }
  0x1a   : > { %679 = vmatprep.subr.bf16.mxu1 %v752_v4  ;;  %463 = vperm.xlu0 %706, %v456_v16   ;;  %v631_v24 = vld [vmem:[%s902_s2 + $0x20] ss:$0 sm:$0xff]  ;;  %v460_v39 = vsel %vm459_vm4, 1.0, %v754_v7 }
  0x1b   : > { %496 = vadd.xlane.f32.xlu1 %v495_v23  ;;  %v455_v35 = vld [vmem:[%s271_s30] sm:$0xff] }
  0x1c   : > { %675 = vmatpush3.bf16.msra.mxu0 %v674_v10  ;;  %v478_v60 = vld [vmem:[#allocation2] sm:$0x1] }
  0x1d   : > { %681 = vmatpush3.bf16.msra.mxu1 %v680_v15 }
  0x1f   : > { %657 = vmatmul.mubr.msk.f32.vlgmr.msra.gmra.mrb[0].mxu0 %vm302_vm2, %v297_v12 }
  0x99   : > { %v464_v38 = vpop.permute.xlu0 %463 }
  0x9a   : > { %v466_v41 = vmul.f32 %v464_v38, %v460_v39 }
  0xa8   : > { %v497_v46 = vpop.xlane.xlu1 %496 }
  0xa9   : > { %v498_v47 = vrot.slane %v497_v46, 4 }
  0xab   : > { %v499_v48 = vadd.f32 %v498_v47, %v497_v46 }
  0xad   : > { %v500_v49 = vrot.slane %v499_v48, 2 }
  0xaf   : > { %v501_v53 = vadd.f32 %v500_v49, %v499_v48 }
  0xb1   : > { %v502_v56 = vrot.slane %v501_v53, 1 }
  0xb3   : > { %v503_v59 = vadd.f32 %v502_v56, %v501_v53 }
  0xf2   : > { %v372_v19 = vpop.f32.mrb[0].mxu0 }
  0xf3   : > { %v373_v20 = vadd.f32 %v629_v18, %v372_v19  ;;  %v658_v21 = vpop.f32.mrb[1].mxu0 }
  0xf5   : > { %v376_v22 = vmax.f32 %v373_v20, 0.0 }
  0xf7   : > { %668 = vmatmul.mubr.msk.f32.vlgmr.msra.gmra.mrb[0].mxu1 %vm302_vm2, %v376_v22 }
 0x1ca   : > { %v450_v25 = vpop.f32.mrb[0].mxu1 }
 0x1cb   : > { %v451_v26 = vadd.f32 %v631_v24, %v450_v25  ;;  %v669_v27 = vpop.f32.mrb[1].mxu1 }
 0x1cd   : > { %454 = vst [vmem:[%s279_s12] sm:$0xff] %v451_v26  ;;  %v470_v28 = vand.u32 2147483647, %v451_v26  ;;  %v467_v36 = vmax.f32 %v451_v26, 0.0  ;;  %v468_v37 = vmul.f32 %v455_v35, %v451_v26 }
 0x1cf   : > { %v471_v29 = vsub.f32 0.0, %v470_v28  ;;  %v469_v42 = vsub.f32 %v467_v36, %v468_v37 }
 0x1d1   : > { %v472_v30 = vmul.f32 1.442695, %v471_v29 }
 0x1d3   : > { %707 = vpow2.f32 %v472_v30 }
 0x1dd   : > { %v708_v31 = vpop.eup %707 }
 0x1de   : > { %v474_v33 = vadd.f32 1.0, %v708_v31 }
 0x1e0   : > { %709 = vlog2.f32 %v474_v33 }
 0x1ea   : > { %v710_v40 = vpop.eup %709 }
 0x1eb   : > { %v476_v43 = vmul.f32 0.6931472, %v710_v40 }
 0x1ed   : > { %v477_v44 = vadd.f32 %v476_v43, %v469_v42 }
 0x1ef   : > { %v479_v45 = vmul.f32 %v477_v44, %v466_v41 }
 0x1f1   : > { %480 = vadd.xlane.f32.xlu0 %v479_v45 }
 0x27e   : > { %v481_v50 = vpop.xlane.xlu0 %480 }
 0x27f   : > { %v482_v51 = vrot.slane %v481_v50, 4 }
 0x281   : > { %v483_v52 = vadd.f32 %v482_v51, %v481_v50 }
 0x283   : > { %v484_v54 = vrot.slane %v483_v52, 2 }
 0x285   : > { %v485_v55 = vadd.f32 %v484_v54, %v483_v52 }
 0x287   : > { %v486_v57 = vrot.slane %v485_v55, 1 }
 0x289   : > { %v487_v58 = vadd.f32 %v486_v57, %v485_v55 }
 0x28b   : > { %682 = vpush %v487_v58 }
 0x28c   : > { %684 = vpush %v503_v59 }
 0x2bb   : > { %511 = sbr.rel (%p633_p5) target bundleno = 729 (0x2d9), region = 48 }
 0x2bc   : > { %s683_s24 = spop %682 }
 0x2bd   : > { %v489_v62 = vstv %s683_s24  ;;  %s685_s30 = spop %684 }
 0x2be   : > { %v490_v63 = vadd.f32 %v489_v62, %v478_v60  ;;  %v505_v0 = vstv %s685_s30 }
 0x2bf   : > { %v506_v1 = vadd.f32 %v505_v0, %v493_v61 }
 0x2c0   : > { %492 = vst.msk [vmem:[#allocation2] sm:$0x1] %vm491_vm5, %v490_v63 }
 0x2c1   : > { %507 = vst.msk [vmem:[#allocation3] sm:$0x1] %vm491_vm5, %v506_v1 }
 0x2c7   : > { %v512_v4 = vld [vmem:[#allocation2] sm:$0x1] }
 0x2c8   : > { %v513_v2 = vld [vmem:[#allocation3] sm:$0x1] }
 0x2c9   : > { %v514_v3 = vmul.f32 4.0, %v513_v2 }
 0x2cb   : > { %711 = vrcp.f32 %v514_v3 }
 0x2d5   : > { %v712_v5 = vpop.eup %711 }
 0x2d6   : > { %v516_v6 = vmul.f32 %v712_v5, %v512_v4 }
 0x2d8   : > { %517 = vst.msk [vmem:[#allocation4] sm:$0x1] %vm491_vm5, %v516_v6 }
 0x2d9 PF: > { %p690_p6 = scmp.eq.s32.totalorder %s798_s22, 3  ;;  %s756_s12 = smov [#allocation4]  }
 0x2da   : > { %s532_s25 = sshll.u32 %s756_s12, 4  ;;  %s533_s25 = int_to_ptr.vmem [resolvable:$true] %s532_s25 }
 0x2db   : > { %s713_s26 = scalar_lea.vmem %s533_s25, 16  ;;  %s719_s28 = scalar_lea.vmem %s533_s25, 32 }
 0x2dc   : > { %p714_p7 = scmp.ne.s32.totalorder %s533_s25, %s713_s26  ;;  %p720_p10 = scmp.lt.s32.totalorder %s533_s25, %s533_s25 }
 0x2dd   : > { %p721_p11 = scmp.lt.s32.totalorder %s719_s28, %s713_s26 }
 0x2de   : > { %p715_p8 = pnand %p714_p7, %p690_p6 }
 0x2df   : > { %p722_p12 = por %p721_p11, %p720_p10 }
 0x2e0   : > { %p716_p9 = pneg %p715_p8 }
 0x2e2   : > { %p723_p13 = pnand %p722_p12, %p716_p9 }
 0x2e4   : > { %726 = shalt.err (!%p723_p13)
}
 0x2e5   : > { %s727_s8 = scalar_lea.hbm %s906_s6, 16 }
 0x2e6   : > { %p728_p0 = scmp.ne.s32.totalorder %s906_s6, %s727_s8  ;;  %p733_p3 = scmp.lt.u32.totalorder %s727_s8, %s906_s6 }
 0x2e8   : > { %p729_p1 = pnand %p728_p0, %p690_p6 }
 0x2ea   : > { %p730_p2 = pneg %p729_p1 }
 0x2ec   : > { %p735_p4 = pnand %p733_p3, %p730_p2 }
 0x2ee   : > { %738 = shalt.err (!%p735_p4)
}
 0x2ef   : > { %687 = dma.vmem_to_hbm [thread:$0]  (%p690_p6), %s533_s25, 16, %s906_s6, [#allocation5]  }
 0x2f0   : > { %744 = dma.done.wait (%p690_p6), [#allocation5], 16  }
 0x2f1   : > { %746 = vsyncadd (%p690_p6), [#allocation5], 4294967280 }
 0x2f2 PF: > { %s18_s21 = sadd.s32 1, %s749_s21  }
 0x2f3   : > { %p15_p5 = scmp.ge.s32.totalorder %s18_s21, 6  }
 0x2f5   :  { %17 = sbr.rel (!%p15_p5) target bundleno = 1 (0x1), region = 93 }
 0x2fc   :  { %552 = vsyncpa [#allocation5], 1 }
 0x2fd   :  { %554 = vsyncpa [#allocation5 + $0x1], 1 }

</bundles_post_ra>
